<compile_context>
chip_gen: v7x
topology: tpu7x:2x2x1
jax: 0.10.0
libtpu: 0.0.40
codegen_flags: <defaults>
</compile_context>

<pallas_src>
import math
from functools import partial

import jax
import jax.numpy as jnp
from jax.experimental import pallas as pl
from jax.experimental.pallas import tpu as pltpu


def _cdiv(a, b):
    return -(-a // b)


def _round_up(x, m):
    return _cdiv(x, m) * m


def _vmem_budgets():
    """(vmem_limit_bytes, per-step tile VMEM budget) chosen per TPU generation."""
    cap = None
    try:
        info = pltpu.get_tpu_info()
        for attr in ("vmem_capacity_bytes", "vmem_size_bytes", "vmem_bytes"):
            val = getattr(info, attr, None)
            if val:
                cap = int(val)
                break
    except Exception:
        cap = None
    if cap is None:
        cap = 64 * 1024 * 1024                      # conservative: v7x-sized VMEM
    if cap >= 100 * 1024 * 1024:                    # v5e / v6e: 128 MiB physical
        return 100 * 1024 * 1024, 80 * 1024 * 1024
    return 48 * 1024 * 1024, 36 * 1024 * 1024       # v7x: 64 MiB physical


def _best_tile_m(tile_k, tile_n, with_acc, budget, dbytes, M):
    """Largest tile_m whose double-buffered footprint fits the VMEM budget."""
    for tm in (2048, 1024, 512, 256, 128, 64, 32, 16, 8):
        fp = (2 * tm * tile_k + 2 * tile_k * tile_n + 2 * tm * tile_n) * dbytes \
             + 2 * tile_n * 4
        if with_acc:
            fp += tm * tile_n * 4
        if fp <= budget:
            # Don't grossly over-pad tiny M.
            while tm > 8 and tm // 2 >= _round_up(M, 8):
                tm //= 2
            return tm
    return None


# --------------------------------------------------------------------------
# Kernel bodies.
# --------------------------------------------------------------------------
def _mm_bias_kernel(p_ref, w_ref, b_ref, o_ref):
    """Single-K-block GEMM: o = patches @ w_hat + bias (f32 accumulation)."""
    acc = jnp.dot(p_ref[...], w_ref[...], preferred_element_type=jnp.float32)
    o_ref[...] = (acc + b_ref[...].astype(jnp.float32)).astype(o_ref.dtype)


def _mm_bias_acc_kernel(p_ref, w_ref, b_ref, o_ref, acc_ref):
    """K-tiled GEMM with f32 VMEM accumulator; bias folded into the init."""
    kk = pl.program_id(2)

    @pl.when(kk == 0)
    def _():
        acc_ref[...] = jnp.broadcast_to(b_ref[...].astype(jnp.float32),
                                        acc_ref.shape)

    acc_ref[...] += jnp.dot(p_ref[...], w_ref[...],
                            preferred_element_type=jnp.float32)

    @pl.when(kk == pl.num_programs(2) - 1)
    def _():
        o_ref[...] = acc_ref[...].astype(o_ref.dtype)


# --------------------------------------------------------------------------
# Plain-JAX glue: im2col (single materialization, K padding folded in).
# --------------------------------------------------------------------------
def _im2col_3d(x, k, stride, padding, out_spatial, k_pad_to):
    """x: (N, C, D, H, W) -> (N*OD*OH*OW, k_pad_to), K order (kd, kh, kw, c)."""
    N, C = x.shape[0], x.shape[1]
    OD, OH, OW = out_spatial
    x_cl = jnp.transpose(x, (0, 2, 3, 4, 1))                     # channels-last
    if padding:
        x_cl = jnp.pad(x_cl, ((0, 0), (padding, padding), (padding, padding),
                              (padding, padding), (0, 0)))
    cols = []
    for kd in range(k):
        for kh in range(k):
            for kw in range(k):
                cols.append(x_cl[:, kd:kd + stride * (OD - 1) + 1:stride,
                                 kh:kh + stride * (OH - 1) + 1:stride,
                                 kw:kw + stride * (OW - 1) + 1:stride, :])
    k_real = k * k * k * C
    if k_pad_to > k_real:                                        # fold K padding in
        cols.append(jnp.zeros((N, OD, OH, OW, k_pad_to - k_real), x.dtype))
    patches = jnp.concatenate(cols, axis=-1)                     # (N,OD,OH,OW,k_pad_to)
    return patches.reshape(N * OD * OH * OW, k_pad_to)


# --------------------------------------------------------------------------
# Forward.
# --------------------------------------------------------------------------
@partial(jax.jit,
         static_argnames=("stride", "padding", "eps", "channels_last", "max_tile_k"))
def _mp_conv3d_impl(x, weight, bias, *, stride, padding, eps, channels_last,
                    max_tile_k):
    N, Cin, D, H, W = x.shape
    Cout, _, k, _, _ = weight.shape
    fan_in = Cin * k * k * k
    compute_dtype = x.dtype
    dbytes = jnp.dtype(compute_dtype).itemsize

    Dp, Hp, Wp = D + 2 * padding, H + 2 * padding, W + 2 * padding
    OD = (Dp - k) // stride + 1
    OH = (Hp - k) // stride + 1
    OW = (Wp - k) // stride + 1
    M = N * OD * OH * OW

    vmem_limit, tile_budget = _vmem_budgets()

    # ---- tile selection -------------------------------------------------
    Cout_pad = _round_up(Cout, 128)
    if Cout_pad <= 512:
        tile_n = Cout_pad
    else:
        tile_n = max(t for t in (512, 256, 128) if Cout_pad % t == 0)
    n_j = Cout_pad // tile_n

    K128 = _round_up(fan_in, 128)
    max_tk = 2048 if max_tile_k is None else max(128, _round_up(max_tile_k, 128))
    force_multi_k = (max_tile_k is not None) and (K128 > max_tk)

    tm_single = _best_tile_m(K128, tile_n, False, tile_budget, dbytes, M)
    use_single_k = (not force_multi_k) and (tm_single is not None) \
        and tm_single >= min(128, _round_up(M, 8))

    if use_single_k:
        num_k, tile_k, K_pad = 1, K128, K128
        tile_m = tm_single
    else:
        num_k = _cdiv(K128, max_tk)
        tile_k = _round_up(_cdiv(K128, num_k), 128)    # no ~2x K over-padding
        K_pad = num_k * tile_k
        tile_m = _best_tile_m(tile_k, tile_n, True, tile_budget, dbytes, M) or 8

    # Megacore: keep >= 2 parallel tiles so both v7x TensorCores get work.
    while n_j * _cdiv(M, tile_m) < 2 and tile_m > 8 and M > 8:
        tile_m //= 2
    n_i = _cdiv(M, tile_m)

    # ---- weight normalization (plain JAX, runs once, O(K*Cout)) ---------
    sqrt_fan_in = math.sqrt(fan_in)
    w_mat = jnp.transpose(weight, (2, 3, 4, 1, 0)).reshape(fan_in, Cout)
    w_mat = w_mat.astype(jnp.float32)
    norm = jnp.sqrt(jnp.sum(w_mat * w_mat, axis=0, keepdims=True))        # (1, Cout)
    w_hat = (w_mat / ((eps + norm / sqrt_fan_in) * sqrt_fan_in)).astype(compute_dtype)
    w_hat = jnp.pad(w_hat, ((0, K_pad - fan_in), (0, Cout_pad - Cout)))
    bias_mat = jnp.pad(bias.astype(jnp.float32).reshape(1, Cout),
                       ((0, 0), (0, Cout_pad - Cout)))

    # ---- im2col (one materialization; K already padded to K_pad) --------
    patches = _im2col_3d(x, k, stride, padding, (OD, OH, OW), K_pad)

    fuse = [True, False, False]    # allow XLA to fuse the im2col producer (operand 0)

    if use_single_k:
        grid = (n_j, n_i)          # j outer so the weight slab stays VMEM resident
        out_flat = pl.pallas_call(
            _mm_bias_kernel,
            out_shape=jax.ShapeDtypeStruct((M, Cout_pad), compute_dtype),
            grid_spec=pltpu.PrefetchScalarGridSpec(
                num_scalar_prefetch=0,
                grid=grid,
                in_specs=[
                    pl.BlockSpec((tile_m, tile_k), lambda j, i: (i, 0)),
                    pl.BlockSpec((tile_k, tile_n), lambda j, i: (0, j)),
                    pl.BlockSpec((1, tile_n), lambda j, i: (0, j)),
                ],
                out_specs=pl.BlockSpec((tile_m, tile_n), lambda j, i: (i, j)),
            ),
            compiler_params=pltpu.CompilerParams(
                dimension_semantics=("parallel", "parallel"),
                allow_input_fusion=fuse,
                vmem_limit_bytes=vmem_limit),
        )(patches, w_hat, bias_mat)
    else:
        grid = (n_j, n_i, num_k)   # K innermost, accumulated in f32 scratch
        out_flat = pl.pallas_call(
            _mm_bias_acc_kernel,
            out_shape=jax.ShapeDtypeStruct((M, Cout_pad), compute_dtype),
            grid_spec=pltpu.PrefetchScalarGridSpec(
                num_scalar_prefetch=0,
                grid=grid,
                in_specs=[
                    pl.BlockSpec((tile_m, tile_k), lambda j, i, kk: (i, kk)),
                    pl.BlockSpec((tile_k, tile_n), lambda j, i, kk: (kk, j)),
                    pl.BlockSpec((1, tile_n), lambda j, i, kk: (0, j)),
                ],
                out_specs=pl.BlockSpec((tile_m, tile_n), lambda j, i, kk: (i, j)),
                scratch_shapes=[pltpu.VMEM((tile_m, tile_n), jnp.float32)],
            ),
            compiler_params=pltpu.CompilerParams(
                dimension_semantics=("parallel", "parallel", "arbitrary"),
                allow_input_fusion=fuse,
                vmem_limit_bytes=vmem_limit),
        )(patches, w_hat, bias_mat)

    out = out_flat[:, :Cout].reshape(N, OD, OH, OW, Cout)
    if channels_last:
        return out                                   # NDHWC, skips the transpose
    return jnp.transpose(out, (0, 4, 1, 2, 3))       # NCDHW (PyTorch layout)


def magnitude_preserving_conv3d(x, weight, bias=None, stride=1, padding=0,
                                eps=1e-4, channels_last=False, max_tile_k=None):
    """x: (N, Cin, D, H, W); weight: (Cout, Cin, k, k, k); bias: (Cout,) or None."""
    if bias is None:
        bias = jnp.zeros((weight.shape[0],), jnp.float32)
    return _mp_conv3d_impl(x, weight, bias, stride=stride, padding=padding,
                           eps=eps, channels_last=channels_last,
                           max_tile_k=max_tile_k)


# --------------------------------------------------------------------------
# Pure-JAX reference matching the PyTorch forward (eval mode).
# --------------------------------------------------------------------------
def _reference(x, weight, bias, stride, padding, eps=1e-4):
    Cout = weight.shape[0]
    fan_in = weight[0].size
    w32 = weight.astype(jnp.float32)
    n = jnp.sqrt(jnp.sum(w32 ** 2, axis=(1, 2, 3, 4), keepdims=True))
    alpha = 1.0 / math.sqrt(fan_in)                       # sqrt(n.numel()/w.numel())
    w = w32 / (eps + alpha * n) / math.sqrt(fan_in)
    out = jax.lax.conv_general_dilated(
        x.astype(jnp.float32), w, window_strides=(stride,) * 3,
        padding=[(padding, padding)] * 3,
        dimension_numbers=("NCDHW", "OIDHW", "NCDHW"))
    return out + bias.astype(jnp.float32).reshape(1, Cout, 1, 1, 1)


if __name__ == "__main__":
    key = jax.random.PRNGKey(0)
    kx, kw, kb, kx2, kw2, kx4, kw4 = jax.random.split(key, 7)

    # Case 1: f32, zero bias (module default init), stride 1, padding 1;
    # also checks the channels_last output path.
    N, Cin, Cout, D, H, W, k = 2, 4, 8, 8, 8, 8, 3
    x = jax.random.normal(kx, (N, Cin, D, H, W), dtype=jnp.float32)
    weight = jax.random.normal(kw, (Cout, Cin, k, k, k), dtype=jnp.float32)
    bias = jnp.zeros((Cout,), dtype=jnp.float32)

    out = jax.block_until_ready(magnitude_preserving_conv3d(x, weight, bias, 1, 1))
    ref = _reference(x, weight, bias, 1, 1)
    assert out.shape == ref.shape
    assert jnp.allclose(out, ref, atol=1e-3, rtol=1e-3), "case 1 mismatch"

    out_cl = jax.block_until_ready(
        magnitude_preserving_conv3d(x, weight, bias, 1, 1, channels_last=True))
    assert jnp.allclose(jnp.transpose(out_cl, (0, 4, 1, 2, 3)), ref,
                        atol=1e-3, rtol=1e-3), "case 1 channels_last mismatch"

    # Case 2: f32, non-zero bias, stride 2, no padding (ragged M tile in-kernel).
    x2 = jax.random.normal(kx2, (N, Cin, D, H, W), dtype=jnp.float32)
    weight2 = jax.random.normal(kw2, (Cout, Cin, k, k, k), dtype=jnp.float32)
    bias2 = jax.random.normal(kb, (Cout,), dtype=jnp.float32)
    out2 = jax.block_until_ready(magnitude_preserving_conv3d(x2, weight2, bias2, 2, 0))
    ref2 = _reference(x2, weight2, bias2, 2, 0)
    assert out2.shape == ref2.shape
    assert jnp.allclose(out2, ref2, atol=1e-3, rtol=1e-3), "case 2 mismatch"

    # Case 3: bf16 inputs -> native bf16 MXU path with f32 accumulation.
    xb = x.astype(jnp.bfloat16)
    wb = weight.astype(jnp.bfloat16)
    out3 = jax.block_until_ready(magnitude_preserving_conv3d(xb, wb, bias, 1, 1))
    ref3 = _reference(xb.astype(jnp.float32), wb.astype(jnp.float32), bias, 1, 1)
    assert out3.dtype == jnp.bfloat16
    assert jnp.allclose(out3.astype(jnp.float32), ref3,
                        atol=6e-2, rtol=6e-2), "case 3 (bf16) mismatch"

    # Case 4: force the K-tiled accumulator path (fan_in > max_tile_k).
    Cin4 = 8
    x4 = jax.random.normal(kx4, (N, Cin4, D, H, W), dtype=jnp.float32)
    weight4 = jax.random.normal(kw4, (Cout, Cin4, k, k, k), dtype=jnp.float32)
    out4 = jax.block_until_ready(
        magnitude_preserving_conv3d(x4, weight4, bias2, 1, 1, max_tile_k=128))
    ref4 = _reference(x4, weight4, bias2, 1, 1)
    assert out4.shape == ref4.shape
    assert jnp.allclose(out4, ref4, atol=1e-3, rtol=1e-3), "case 4 mismatch"

    print("KERNEL_OK")
</pallas_src>

<mosaic_0001>
module attributes {stable_mosaic.version = 11 : i64} {
  func.func @_mm_bias_kernel(%arg0: i32, %arg1: i32, %arg2: memref<512x128xf32, #tpu.memory_space<vmem>>, %arg3: memref<128x128xf32, #tpu.memory_space<vmem>>, %arg4: memref<1x128xf32, #tpu.memory_space<vmem>>, %arg5: memref<512x128xf32, #tpu.memory_space<vmem>>) attributes {dimension_semantics = [#tpu.dimension_semantics<parallel>, #tpu.dimension_semantics<parallel>], iteration_bounds = array<i64: 1, 2>, scalar_prefetch = 0 : i64, scratch_operands = 0 : i64, tpu.core_type = #tpu.core_type<tc>, window_params = [{transform_indices = @transform_0, window_bounds = array<i64: 512, 128>}, {transform_indices = @transform_1, window_bounds = array<i64: 128, 128>}, {transform_indices = @transform_2, window_bounds = array<i64: 1, 128>}, {transform_indices = @transform_3, window_bounds = array<i64: 512, 128>}]} {
    %c0 = arith.constant 0 : index
    %c0_0 = arith.constant 0 : index
    %0 = vector.load %arg2[%c0, %c0_0] : memref<512x128xf32, #tpu.memory_space<vmem>>, vector<512x128xf32>
    %c0_1 = arith.constant 0 : index
    %c0_2 = arith.constant 0 : index
    %1 = vector.load %arg3[%c0_1, %c0_2] : memref<128x128xf32, #tpu.memory_space<vmem>>, vector<128x128xf32>
    %cst = arith.constant dense<0.000000e+00> : vector<512x128xf32>
    %2 = tpu.matmul %0, %1, %cst {dimension_numbers = #tpu.dot_dimension_numbers<[1], [0], [0], [1], [0, 0, 1, 1], [], []>} : vector<512x128xf32>, vector<128x128xf32>, vector<512x128xf32> -> vector<512x128xf32>
    %c0_3 = arith.constant 0 : index
    %c0_4 = arith.constant 0 : index
    %3 = vector.load %arg4[%c0_3, %c0_4] : memref<1x128xf32, #tpu.memory_space<vmem>>, vector<1x128xf32>
    %4 = vector.broadcast %3 : vector<1x128xf32> to vector<512x128xf32>
    %5 = arith.addf %2, %4 : vector<512x128xf32>
    %c0_5 = arith.constant 0 : index
    %c0_6 = arith.constant 0 : index
    %6 = vector.load %arg5[%c0_5, %c0_6] : memref<512x128xf32, #tpu.memory_space<vmem>>, vector<512x128xf32>
    tpu.vector_store %arg5[%c0_5, %c0_6], %5 {strides = array<i32>} : memref<512x128xf32, #tpu.memory_space<vmem>>, vector<512x128xf32>,
    return
  }
  func.func @transform_0(%arg0: i32, %arg1: i32) -> (i32, i32) {
    %c0_i32 = arith.constant 0 : i32
    %c0_i32_0 = arith.constant 0 : i32
    return %arg1, %c0_i32 : i32, i32
  }
  func.func @transform_1(%arg0: i32, %arg1: i32) -> (i32, i32) {
    %c0_i32 = arith.constant 0 : i32
    %c0_i32_0 = arith.constant 0 : i32
    return %c0_i32, %arg0 : i32, i32
  }
  func.func @transform_2(%arg0: i32, %arg1: i32) -> (i32, i32) {
    %c0_i32 = arith.constant 0 : i32
    %c0_i32_0 = arith.constant 0 : i32
    return %c0_i32, %arg0 : i32, i32
  }
  func.func @transform_3(%arg0: i32, %arg1: i32) -> (i32, i32) {
    %c0_i32 = arith.constant 0 : i32
    return %arg1, %arg0 : i32, i32
  }
}

</mosaic_0001>

<bundles_post_ra>
// kernel: _mp_conv3d_impl.1
= control target key start
LH: loop header
LB: loop body
LE: loop exit
PB: predicated region body
PF: predicated region fallthrough
CT: control target
= control target key end

     0   :  { %s1201_s12 = smov 0   ;;  %s1203_s13 = smov 0   ;;  %s1490_s0 = inlined_call_operand.vmem [shape: f32[1024,128], index: 0, kind: input, shape index: {}]   ;;  %s1491_s1 = inlined_call_operand.vmem [shape: f32[128,128], index: 1, kind: input, shape index: {}]   ;;  %s1492_s2 = inlined_call_operand.vmem [shape: f32[1,128], index: 2, kind: input, shape index: {}]   ;;  %s1493_s3 = inlined_call_operand.vmem [shape: f32[1024,128], index: 3, kind: output, shape index: {}]  }
   0x1   :  { %s1205_s14 = smov 0  }
   0x2 LB: > { %s22_s15 = sadd.s32 1, %s1175_s13  ;;  %p869_p0 = scmp.ge.s32.totalorder %s1179_s14, 1  ;;  %s1179_s14 = sphi %s1205_s14, %s13_s14   ;;  %s1175_s13 = sphi %s1203_s13, %s1495_s13   ;;  %s1171_s12 = sphi %s1201_s12, %s1494_s12  }
   0x3   : > { %p23_p1 = scmp.ge.s32.totalorder %s22_s15, 2  ;;  %p169_p2 = scmp.lt.s32.totalorder %s1179_s14, 3 }
   0x5   : > { %s1497_s15 = smov (%p23_p1, %s22_s15), 0  ;;  %p170_p3 = pnand %p869_p0, %p169_p2 }
   0x6   : > { %v289_v0 = vld [vmem:[%s1491_s1] sm:$0xff] (!%p170_p3)  ;;  %v290_v1 = vld [vmem:[%s1491_s1 + $0x8] sm:$0xff] (!%p170_p3)  ;;  %v291_v2 = vld [vmem:[%s1491_s1 + $0x10] sm:$0xff] (!%p170_p3)  ;;  %s870_s22 = sshll.u32 (!%p170_p3), %s1171_s12, 6 }
   0x7   : > { %173 = sbr.rel (%p170_p3) target bundleno = 318 (0x13e), region = 32  ;;  %v1085_v3 = vpack.c.bf16 (!%p170_p3), %v290_v1, %v289_v0  ;;  %v292_v4 = vld [vmem:[%s1491_s1 + $0x18] sm:$0xff] (!%p170_p3)  ;;  %p204_p4 = scmp.lt.s32.totalorder (!%p170_p3), %s870_s22, 127  ;;  %v293_v6 = vld [vmem:[%s1491_s1 + $0x20] sm:$0xff] (!%p170_p3)  ;;  %v294_v7 = vld [vmem:[%s1491_s1 + $0x28] sm:$0xff] (!%p170_p3) }
   0x8   : > { %v1089_v5 = vpack.c.bf16 (!%p170_p3), %v292_v4, %v291_v2  ;;  %v1093_v8 = vpack.c.bf16 (!%p170_p3), %v294_v7, %v293_v6  ;;  %v295_v9 = vld [vmem:[%s1491_s1 + $0x30] sm:$0xff] (!%p170_p3)  ;;  %v296_v10 = vld [vmem:[%s1491_s1 + $0x38] sm:$0xff] (!%p170_p3)  ;;  %v297_v14 = vld [vmem:[%s1491_s1 + $0x40] sm:$0xff] (!%p170_p3) }
   0x9   : > { %1086 = vmatprep.subr.bf16.mxu0 (!%p170_p3), %v1085_v3  ;;  %1117 = vmatprep.subr.bf16.mxu1 (!%p170_p3), %v1085_v3  ;;  %v1097_v13 = vpack.c.bf16 (!%p170_p3), %v296_v10, %v295_v9  ;;  %v298_v15 = vld [vmem:[%s1491_s1 + $0x48] sm:$0xff] (!%p170_p3)  ;;  %v299_v17 = vld [vmem:[%s1491_s1 + $0x50] sm:$0xff] (!%p170_p3)  ;;  %v300_v18 = vld [vmem:[%s1491_s1 + $0x58] sm:$0xff] (!%p170_p3) }
   0xa   : > { %1088 = vmatpush3.bf16.msra.mxu0 (!%p170_p3), %v1085_v3  ;;  %1125 = vmatpush3.bf16.msra.mxu1 (!%p170_p3), %v1085_v3  ;;  %v1101_v16 = vpack.c.bf16 (!%p170_p3), %v298_v15, %v297_v14  ;;  %v1105_v19 = vpack.c.bf16 (!%p170_p3), %v300_v18, %v299_v17  ;;  %v301_v20 = vld [vmem:[%s1491_s1 + $0x60] sm:$0xff] (!%p170_p3)  ;;  %v302_v21 = vld [vmem:[%s1491_s1 + $0x68] sm:$0xff] (!%p170_p3)  ;;  %v303_v23 = vld [vmem:[%s1491_s1 + $0x70] sm:$0xff] (!%p170_p3) }
   0xb   : > { %1090 = vmatprep.subr.bf16.mxu0 (!%p170_p3), %v1089_v5  ;;  %1118 = vmatprep.subr.bf16.mxu1 (!%p170_p3), %v1089_v5  ;;  %v1109_v22 = vpack.c.bf16 (!%p170_p3), %v302_v21, %v301_v20  ;;  %v304_v24 = vld [vmem:[%s1491_s1 + $0x78] sm:$0xff] (!%p170_p3) }
   0xc   : > { %v1113_v25 = vpack.c.bf16 (!%p170_p3), %v304_v24, %v303_v23  ;;  %v1344_v24 = vld [vmem:[%s1492_s2] ss:$0 sm:$0xff] (!%p170_p3) }
   0xe   : > { %s1499_s22 = smov (!%p204_p4, %s870_s22), 127  ;;  %1092 = vmatpush3.bf16.msra.mxu0 %v1089_v5  ;;  %1126 = vmatpush3.bf16.msra.mxu1 %v1089_v5 }
   0xf   : > { %s871_s29 = sshll.u32 %s1499_s22, 3  ;;  %1094 = vmatprep.subr.bf16.mxu0 %v1093_v8  ;;  %1119 = vmatprep.subr.bf16.mxu1 %v1093_v8 }
  0x10   : > { %s1251_s9 = scalar_lea.vmem %s1490_s0, %s871_s29  ;;  %s1351_s8 = scalar_lea.vmem %s1493_s3, %s871_s29 }
  0x11   : > { %v225_v11 = vld [vmem:[%s1251_s9] sm:$0xff]  ;;  %v226_v26 = vld [vmem:[%s1251_s9 + $0x8] sm:$0xff]  ;;  %v227_v28 = vld [vmem:[%s1251_s9 + $0x10] sm:$0xff] }
  0x12   : > { %v257_v12 = vld [vmem:[%s1251_s9 + $0x100] sm:$0xff]  ;;  %989 = vmatprep.mubr.f32.mxu0 %v225_v11  ;;  %1096 = vmatpush3.bf16.msra.mxu0 %v1093_v8  ;;  %v258_v27 = vld [vmem:[%s1251_s9 + $0x108] sm:$0xff]  ;;  %v259_v29 = vld [vmem:[%s1251_s9 + $0x110] sm:$0xff] }
  0x13   : > { %1037 = vmatprep.mubr.f32.mxu1 %v257_v12  ;;  %1127 = vmatpush3.bf16.msra.mxu1 %v1093_v8  ;;  %v228_v30 = vld [vmem:[%s1251_s9 + $0x18] sm:$0xff]  ;;  %v229_v32 = vld [vmem:[%s1251_s9 + $0x20] sm:$0xff]  ;;  %v230_v34 = vld [vmem:[%s1251_s9 + $0x28] sm:$0xff] }
  0x14   : > { %1098 = vmatprep.subr.bf16.mxu0 %v1097_v13  ;;  %1120 = vmatprep.subr.bf16.mxu1 %v1097_v13  ;;  %v260_v31 = vld [vmem:[%s1251_s9 + $0x118] sm:$0xff]  ;;  %v261_v33 = vld [vmem:[%s1251_s9 + $0x120] sm:$0xff]  ;;  %v262_v35 = vld [vmem:[%s1251_s9 + $0x128] sm:$0xff] }
  0x15   : > { %v231_v36 = vld [vmem:[%s1251_s9 + $0x30] sm:$0xff]  ;;  %v232_v38 = vld [vmem:[%s1251_s9 + $0x38] sm:$0xff]  ;;  %v233_v40 = vld [vmem:[%s1251_s9 + $0x40] sm:$0xff] }
  0x16   : > { %1100 = vmatpush3.bf16.msra.mxu0 %v1097_v13  ;;  %v263_v37 = vld [vmem:[%s1251_s9 + $0x130] sm:$0xff]  ;;  %v264_v39 = vld [vmem:[%s1251_s9 + $0x138] sm:$0xff]  ;;  %v265_v41 = vld [vmem:[%s1251_s9 + $0x140] sm:$0xff] }
  0x17   : > { %1128 = vmatpush3.bf16.msra.mxu1 %v1097_v13  ;;  %1102 = vmatprep.subr.bf16.mxu0 %v1101_v16  ;;  %v234_v42 = vld [vmem:[%s1251_s9 + $0x48] sm:$0xff]  ;;  %v235_v44 = vld [vmem:[%s1251_s9 + $0x50] sm:$0xff]  ;;  %v236_v46 = vld [vmem:[%s1251_s9 + $0x58] sm:$0xff] }
  0x18   : > { %1121 = vmatprep.subr.bf16.mxu1 %v1101_v16  ;;  %v266_v43 = vld [vmem:[%s1251_s9 + $0x148] sm:$0xff]  ;;  %v267_v45 = vld [vmem:[%s1251_s9 + $0x150] sm:$0xff]  ;;  %v268_v47 = vld [vmem:[%s1251_s9 + $0x158] sm:$0xff] }
  0x19   : > { %v237_v48 = vld [vmem:[%s1251_s9 + $0x60] sm:$0xff]  ;;  %v238_v50 = vld [vmem:[%s1251_s9 + $0x68] sm:$0xff]  ;;  %v239_v52 = vld [vmem:[%s1251_s9 + $0x70] sm:$0xff] }
  0x1a   : > { %1104 = vmatpush3.bf16.msra.mxu0 %v1101_v16  ;;  %v269_v49 = vld [vmem:[%s1251_s9 + $0x160] sm:$0xff]  ;;  %v270_v51 = vld [vmem:[%s1251_s9 + $0x168] sm:$0xff]  ;;  %v271_v53 = vld [vmem:[%s1251_s9 + $0x170] sm:$0xff] }
  0x1b   : > { %1129 = vmatpush3.bf16.msra.mxu1 %v1101_v16  ;;  %1106 = vmatprep.subr.bf16.mxu0 %v1105_v19  ;;  %v240_v54 = vld [vmem:[%s1251_s9 + $0x78] sm:$0xff]  ;;  %v241_v56 = vld [vmem:[%s1251_s9 + $0x80] sm:$0xff]  ;;  %v242_v58 = vld [vmem:[%s1251_s9 + $0x88] sm:$0xff] }
  0x1c   : > { %1122 = vmatprep.subr.bf16.mxu1 %v1105_v19  ;;  %v272_v55 = vld [vmem:[%s1251_s9 + $0x178] sm:$0xff]  ;;  %v273_v57 = vld [vmem:[%s1251_s9 + $0x180] sm:$0xff]  ;;  %v274_v59 = vld [vmem:[%s1251_s9 + $0x188] sm:$0xff] }
  0x1d   : > { %v243_v60 = vld [vmem:[%s1251_s9 + $0x90] sm:$0xff]  ;;  %v244_v62 = vld [vmem:[%s1251_s9 + $0x98] sm:$0xff]  ;;  %v245_v0 = vld [vmem:[%s1251_s9 + $0xa0] sm:$0xff] }
  0x1e   : > { %1108 = vmatpush3.bf16.msra.mxu0 %v1105_v19  ;;  %v275_v61 = vld [vmem:[%s1251_s9 + $0x190] sm:$0xff]  ;;  %v276_v63 = vld [vmem:[%s1251_s9 + $0x198] sm:$0xff]  ;;  %v277_v1 = vld [vmem:[%s1251_s9 + $0x1a0] sm:$0xff] }
  0x1f   : > { %1130 = vmatpush3.bf16.msra.mxu1 %v1105_v19  ;;  %1110 = vmatprep.subr.bf16.mxu0 %v1109_v22  ;;  %v246_v2 = vld [vmem:[%s1251_s9 + $0xa8] sm:$0xff]  ;;  %v247_v4 = vld [vmem:[%s1251_s9 + $0xb0] sm:$0xff]  ;;  %v248_v6 = vld [vmem:[%s1251_s9 + $0xb8] sm:$0xff] }
  0x20   : > { %1123 = vmatprep.subr.bf16.mxu1 %v1109_v22  ;;  %v278_v3 = vld [vmem:[%s1251_s9 + $0x1a8] sm:$0xff]  ;;  %v279_v5 = vld [vmem:[%s1251_s9 + $0x1b0] sm:$0xff]  ;;  %v280_v7 = vld [vmem:[%s1251_s9 + $0x1b8] sm:$0xff] }
  0x21   : > { %v249_v8 = vld [vmem:[%s1251_s9 + $0xc0] sm:$0xff]  ;;  %v250_v10 = vld [vmem:[%s1251_s9 + $0xc8] sm:$0xff]  ;;  %v251_v12 = vld [vmem:[%s1251_s9 + $0xd0] sm:$0xff] }
  0x22   : > { %1112 = vmatpush3.bf16.msra.mxu0 %v1109_v22  ;;  %v281_v9 = vld [vmem:[%s1251_s9 + $0x1c0] sm:$0xff]  ;;  %v282_v11 = vld [vmem:[%s1251_s9 + $0x1c8] sm:$0xff]  ;;  %v283_v13 = vld [vmem:[%s1251_s9 + $0x1d0] sm:$0xff] }
  0x23   : > { %1131 = vmatpush3.bf16.msra.mxu1 %v1109_v22  ;;  %1114 = vmatprep.subr.bf16.mxu0 %v1113_v25  ;;  %v252_v14 = vld [vmem:[%s1251_s9 + $0xd8] sm:$0xff]  ;;  %v253_v16 = vld [vmem:[%s1251_s9 + $0xe0] sm:$0xff]  ;;  %v254_v18 = vld [vmem:[%s1251_s9 + $0xe8] sm:$0xff] }
  0x24   : > { %1124 = vmatprep.subr.bf16.mxu1 %v1113_v25  ;;  %v284_v15 = vld [vmem:[%s1251_s9 + $0x1d8] sm:$0xff]  ;;  %v285_v17 = vld [vmem:[%s1251_s9 + $0x1e0] sm:$0xff]  ;;  %v286_v19 = vld [vmem:[%s1251_s9 + $0x1e8] sm:$0xff] }
  0x25   : > { %v255_v20 = vld [vmem:[%s1251_s9 + $0xf0] sm:$0xff]  ;;  %v256_v22 = vld [vmem:[%s1251_s9 + $0xf8] sm:$0xff] }
  0x26   : > { %1116 = vmatpush3.bf16.msra.mxu0 %v1113_v25  ;;  %v287_v21 = vld [vmem:[%s1251_s9 + $0x1f0] sm:$0xff]  ;;  %v288_v23 = vld [vmem:[%s1251_s9 + $0x1f8] sm:$0xff] }
  0x27   : > { %1132 = vmatpush3.bf16.msra.mxu1 %v1113_v25 }
  0x29   : > { %990 = vmatmul.mubr.f32.vlgmr.msra.gmra.mrb[0].mxu0 %v226_v26 }
  0x2a   : > { %1038 = vmatmul.mubr.f32.vlgmr.msra.gmra.mrb[0].mxu1 %v258_v27  ;;  %992 = vmatprep.mubr.f32.mxu0 %v227_v28 }
  0x2b   : > { %1040 = vmatprep.mubr.f32.mxu1 %v259_v29 }
  0x2d   : > { %993 = vmatmul.mubr.f32.gmra.mrb[2].mxu0 %v228_v30 }
  0x2e   : > { %1041 = vmatmul.mubr.f32.gmra.mrb[2].mxu1 %v260_v31  ;;  %995 = vmatprep.mubr.f32.mxu0 %v229_v32 }
  0x2f   : > { %1043 = vmatprep.mubr.f32.mxu1 %v261_v33 }
  0x31   : > { %996 = vmatmul.mubr.f32.gmra.mrb[4].mxu0 %v230_v34 }
  0x32   : > { %1044 = vmatmul.mubr.f32.gmra.mrb[4].mxu1 %v262_v35  ;;  %998 = vmatprep.mubr.f32.mxu0 %v231_v36 }
  0x33   : > { %1046 = vmatprep.mubr.f32.mxu1 %v263_v37 }
  0x35   : > { %999 = vmatmul.mubr.f32.gmra.mrb[6].mxu0 %v232_v38 }
  0x36   : > { %1047 = vmatmul.mubr.f32.gmra.mrb[6].mxu1 %v264_v39  ;;  %1001 = vmatprep.mubr.f32.mxu0 %v233_v40 }
  0x37   : > { %1049 = vmatprep.mubr.f32.mxu1 %v265_v41 }
  0x39   : > { %1002 = vmatmul.mubr.f32.gmra.mrb[8].mxu0 %v234_v42 }
  0x3a   : > { %1050 = vmatmul.mubr.f32.gmra.mrb[8].mxu1 %v266_v43  ;;  %1004 = vmatprep.mubr.f32.mxu0 %v235_v44 }
  0x3b   : > { %1052 = vmatprep.mubr.f32.mxu1 %v267_v45 }
  0x3d   : > { %1005 = vmatmul.mubr.f32.gmra.mrb[10].mxu0 %v236_v46 }
  0x3e   : > { %1053 = vmatmul.mubr.f32.gmra.mrb[10].mxu1 %v268_v47  ;;  %1007 = vmatprep.mubr.f32.mxu0 %v237_v48 }
  0x3f   : > { %1055 = vmatprep.mubr.f32.mxu1 %v269_v49 }
  0x41   : > { %1008 = vmatmul.mubr.f32.gmra.mrb[12].mxu0 %v238_v50 }
  0x42   : > { %1056 = vmatmul.mubr.f32.gmra.mrb[12].mxu1 %v270_v51  ;;  %1010 = vmatprep.mubr.f32.mxu0 %v239_v52 }
  0x43   : > { %1058 = vmatprep.mubr.f32.mxu1 %v271_v53 }
  0x45   : > { %1011 = vmatmul.mubr.f32.gmra.mrb[14].mxu0 %v240_v54 }
  0x46   : > { %1059 = vmatmul.mubr.f32.gmra.mrb[14].mxu1 %v272_v55  ;;  %1013 = vmatprep.mubr.f32.mxu0 %v241_v56 }
  0x47   : > { %1061 = vmatprep.mubr.f32.mxu1 %v273_v57 }
  0x49   : > { %1014 = vmatmul.mubr.f32.gmra.mrb[16].mxu0 %v242_v58 }
  0x4a   : > { %1062 = vmatmul.mubr.f32.gmra.mrb[16].mxu1 %v274_v59  ;;  %1016 = vmatprep.mubr.f32.mxu0 %v243_v60 }
  0x4b   : > { %1064 = vmatprep.mubr.f32.mxu1 %v275_v61 }
  0x4d   : > { %1017 = vmatmul.mubr.f32.gmra.mrb[18].mxu0 %v244_v62 }
  0x4e   : > { %1065 = vmatmul.mubr.f32.gmra.mrb[18].mxu1 %v276_v63  ;;  %1019 = vmatprep.mubr.f32.mxu0 %v245_v0 }
  0x4f   : > { %1067 = vmatprep.mubr.f32.mxu1 %v277_v1 }
  0x51   : > { %1020 = vmatmul.mubr.f32.gmra.mrb[20].mxu0 %v246_v2 }
  0x52   : > { %1068 = vmatmul.mubr.f32.gmra.mrb[20].mxu1 %v278_v3  ;;  %1022 = vmatprep.mubr.f32.mxu0 %v247_v4 }
  0x53   : > { %1070 = vmatprep.mubr.f32.mxu1 %v279_v5 }
  0x55   : > { %1023 = vmatmul.mubr.f32.gmra.mrb[22].mxu0 %v248_v6 }
  0x56   : > { %1071 = vmatmul.mubr.f32.gmra.mrb[22].mxu1 %v280_v7  ;;  %1025 = vmatprep.mubr.f32.mxu0 %v249_v8 }
  0x57   : > { %1073 = vmatprep.mubr.f32.mxu1 %v281_v9 }
  0x59   : > { %1026 = vmatmul.mubr.f32.gmra.mrb[24].mxu0 %v250_v10 }
  0x5a   : > { %1074 = vmatmul.mubr.f32.gmra.mrb[24].mxu1 %v282_v11  ;;  %1028 = vmatprep.mubr.f32.mxu0 %v251_v12 }
  0x5b   : > { %1076 = vmatprep.mubr.f32.mxu1 %v283_v13 }
  0x5d   : > { %1029 = vmatmul.mubr.f32.gmra.mrb[26].mxu0 %v252_v14 }
  0x5e   : > { %1077 = vmatmul.mubr.f32.gmra.mrb[26].mxu1 %v284_v15  ;;  %1031 = vmatprep.mubr.f32.mxu0 %v253_v16 }
  0x5f   : > { %1079 = vmatprep.mubr.f32.mxu1 %v285_v17 }
  0x61   : > { %1032 = vmatmul.mubr.f32.gmra.mrb[28].mxu0 %v254_v18 }
  0x62   : > { %1080 = vmatmul.mubr.f32.gmra.mrb[28].mxu1 %v286_v19  ;;  %1034 = vmatprep.mubr.f32.mxu0 %v255_v20 }
  0x63   : > { %1082 = vmatprep.mubr.f32.mxu1 %v287_v21 }
  0x65   : > { %1035 = vmatmul.mubr.f32.gmra.mrb[30].mxu0 %v256_v22 }
  0x66   : > { %1083 = vmatmul.mubr.f32.gmra.mrb[30].mxu1 %v288_v23 }
  0xfc   : > { %v991_v25 = vpop.f32.mrb[0].mxu0 }
  0xfd   : > { %v1039_v26 = vpop.f32.mrb[0].mxu1  ;;  %v384_v27 = vadd.f32 %v991_v25, %v1344_v24  ;;  %v378_v29 = vpop.f32.mrb[1].mxu0 }
  0xfe   : > { %v544_v28 = vadd.f32 %v1039_v26, %v1344_v24  ;;  %v538_v30 = vpop.f32.mrb[1].mxu1  ;;  %v379_v31 = vadd.f32 %v1344_v24, %v378_v29 }
  0xff   : > { %v539_v32 = vadd.f32 %v1344_v24, %v538_v30  ;;  %698 = vst [vmem:[%s1351_s8 + $0x8] sm:$0xff] %v384_v27 }
 0x100   : > { %730 = vst [vmem:[%s1351_s8 + $0x108] sm:$0xff] %v544_v28  ;;  %697 = vst [vmem:[%s1351_s8] sm:$0xff] %v379_v31  ;;  %v994_v33 = vpop.f32.mrb[2].mxu0 }
 0x101   : > { %729 = vst [vmem:[%s1351_s8 + $0x100] sm:$0xff] %v539_v32  ;;  %v1042_v34 = vpop.f32.mrb[2].mxu1  ;;  %v394_v35 = vadd.f32 %v994_v33, %v1344_v24  ;;  %v388_v37 = vpop.f32.mrb[3].mxu0 }
 0x102   : > { %v554_v36 = vadd.f32 %v1042_v34, %v1344_v24  ;;  %v548_v38 = vpop.f32.mrb[3].mxu1  ;;  %v389_v39 = vadd.f32 %v1344_v24, %v388_v37 }
 0x103   : > { %v549_v40 = vadd.f32 %v1344_v24, %v548_v38  ;;  %700 = vst [vmem:[%s1351_s8 + $0x18] sm:$0xff] %v394_v35 }
 0x104   : > { %732 = vst [vmem:[%s1351_s8 + $0x118] sm:$0xff] %v554_v36  ;;  %699 = vst [vmem:[%s1351_s8 + $0x10] sm:$0xff] %v389_v39  ;;  %v997_v41 = vpop.f32.mrb[4].mxu0 }
 0x105   : > { %731 = vst [vmem:[%s1351_s8 + $0x110] sm:$0xff] %v549_v40  ;;  %v1045_v42 = vpop.f32.mrb[4].mxu1  ;;  %v404_v43 = vadd.f32 %v997_v41, %v1344_v24  ;;  %v398_v45 = vpop.f32.mrb[5].mxu0 }
 0x106   : > { %v564_v44 = vadd.f32 %v1045_v42, %v1344_v24  ;;  %v558_v46 = vpop.f32.mrb[5].mxu1  ;;  %v399_v47 = vadd.f32 %v1344_v24, %v398_v45 }
 0x107   : > { %v559_v48 = vadd.f32 %v1344_v24, %v558_v46  ;;  %702 = vst [vmem:[%s1351_s8 + $0x28] sm:$0xff] %v404_v43 }
 0x108   : > { %734 = vst [vmem:[%s1351_s8 + $0x128] sm:$0xff] %v564_v44  ;;  %701 = vst [vmem:[%s1351_s8 + $0x20] sm:$0xff] %v399_v47  ;;  %v1000_v49 = vpop.f32.mrb[6].mxu0 }
 0x109   : > { %733 = vst [vmem:[%s1351_s8 + $0x120] sm:$0xff] %v559_v48  ;;  %v1048_v50 = vpop.f32.mrb[6].mxu1  ;;  %v414_v51 = vadd.f32 %v1000_v49, %v1344_v24  ;;  %v408_v53 = vpop.f32.mrb[7].mxu0 }
 0x10a   : > { %v574_v52 = vadd.f32 %v1048_v50, %v1344_v24  ;;  %v568_v54 = vpop.f32.mrb[7].mxu1  ;;  %v409_v55 = vadd.f32 %v1344_v24, %v408_v53 }
 0x10b   : > { %v569_v56 = vadd.f32 %v1344_v24, %v568_v54  ;;  %704 = vst [vmem:[%s1351_s8 + $0x38] sm:$0xff] %v414_v51 }
 0x10c   : > { %736 = vst [vmem:[%s1351_s8 + $0x138] sm:$0xff] %v574_v52  ;;  %703 = vst [vmem:[%s1351_s8 + $0x30] sm:$0xff] %v409_v55  ;;  %v1003_v57 = vpop.f32.mrb[8].mxu0 }
 0x10d   : > { %735 = vst [vmem:[%s1351_s8 + $0x130] sm:$0xff] %v569_v56  ;;  %v1051_v58 = vpop.f32.mrb[8].mxu1  ;;  %v424_v59 = vadd.f32 %v1003_v57, %v1344_v24  ;;  %v418_v61 = vpop.f32.mrb[9].mxu0 }
 0x10e   : > { %v584_v60 = vadd.f32 %v1051_v58, %v1344_v24  ;;  %v578_v62 = vpop.f32.mrb[9].mxu1  ;;  %v419_v63 = vadd.f32 %v1344_v24, %v418_v61 }
 0x10f   : > { %v579_v0 = vadd.f32 %v1344_v24, %v578_v62  ;;  %706 = vst [vmem:[%s1351_s8 + $0x48] sm:$0xff] %v424_v59 }
 0x110   : > { %738 = vst [vmem:[%s1351_s8 + $0x148] sm:$0xff] %v584_v60  ;;  %705 = vst [vmem:[%s1351_s8 + $0x40] sm:$0xff] %v419_v63  ;;  %v1006_v1 = vpop.f32.mrb[10].mxu0 }
 0x111   : > { %737 = vst [vmem:[%s1351_s8 + $0x140] sm:$0xff] %v579_v0  ;;  %v1054_v2 = vpop.f32.mrb[10].mxu1  ;;  %v434_v3 = vadd.f32 %v1006_v1, %v1344_v24  ;;  %v428_v5 = vpop.f32.mrb[11].mxu0 }
 0x112   : > { %v594_v4 = vadd.f32 %v1054_v2, %v1344_v24  ;;  %v588_v6 = vpop.f32.mrb[11].mxu1  ;;  %v429_v7 = vadd.f32 %v1344_v24, %v428_v5 }
 0x113   : > { %v589_v8 = vadd.f32 %v1344_v24, %v588_v6  ;;  %708 = vst [vmem:[%s1351_s8 + $0x58] sm:$0xff] %v434_v3 }
 0x114   : > { %740 = vst [vmem:[%s1351_s8 + $0x158] sm:$0xff] %v594_v4  ;;  %707 = vst [vmem:[%s1351_s8 + $0x50] sm:$0xff] %v429_v7  ;;  %v1009_v9 = vpop.f32.mrb[12].mxu0 }
 0x115   : > { %739 = vst [vmem:[%s1351_s8 + $0x150] sm:$0xff] %v589_v8  ;;  %v1057_v10 = vpop.f32.mrb[12].mxu1  ;;  %v444_v11 = vadd.f32 %v1009_v9, %v1344_v24  ;;  %v438_v13 = vpop.f32.mrb[13].mxu0 }
 0x116   : > { %v604_v12 = vadd.f32 %v1057_v10, %v1344_v24  ;;  %v598_v14 = vpop.f32.mrb[13].mxu1  ;;  %v439_v15 = vadd.f32 %v1344_v24, %v438_v13 }
 0x117   : > { %v599_v16 = vadd.f32 %v1344_v24, %v598_v14  ;;  %710 = vst [vmem:[%s1351_s8 + $0x68] sm:$0xff] %v444_v11 }
 0x118   : > { %742 = vst [vmem:[%s1351_s8 + $0x168] sm:$0xff] %v604_v12  ;;  %709 = vst [vmem:[%s1351_s8 + $0x60] sm:$0xff] %v439_v15  ;;  %v1012_v17 = vpop.f32.mrb[14].mxu0 }
 0x119   : > { %741 = vst [vmem:[%s1351_s8 + $0x160] sm:$0xff] %v599_v16  ;;  %v1060_v18 = vpop.f32.mrb[14].mxu1  ;;  %v454_v19 = vadd.f32 %v1012_v17, %v1344_v24  ;;  %v448_v21 = vpop.f32.mrb[15].mxu0 }
 0x11a   : > { %v614_v20 = vadd.f32 %v1060_v18, %v1344_v24  ;;  %v608_v22 = vpop.f32.mrb[15].mxu1  ;;  %v449_v23 = vadd.f32 %v1344_v24, %v448_v21 }
 0x11b   : > { %v609_v25 = vadd.f32 %v1344_v24, %v608_v22  ;;  %712 = vst [vmem:[%s1351_s8 + $0x78] sm:$0xff] %v454_v19 }
 0x11c   : > { %744 = vst [vmem:[%s1351_s8 + $0x178] sm:$0xff] %v614_v20  ;;  %711 = vst [vmem:[%s1351_s8 + $0x70] sm:$0xff] %v449_v23  ;;  %v1015_v26 = vpop.f32.mrb[16].mxu0 }
 0x11d   : > { %743 = vst [vmem:[%s1351_s8 + $0x170] sm:$0xff] %v609_v25  ;;  %v1063_v27 = vpop.f32.mrb[16].mxu1  ;;  %v464_v28 = vadd.f32 %v1015_v26, %v1344_v24  ;;  %v458_v30 = vpop.f32.mrb[17].mxu0 }
 0x11e   : > { %v624_v29 = vadd.f32 %v1063_v27, %v1344_v24  ;;  %v618_v31 = vpop.f32.mrb[17].mxu1  ;;  %v459_v32 = vadd.f32 %v1344_v24, %v458_v30 }
 0x11f   : > { %v619_v33 = vadd.f32 %v1344_v24, %v618_v31  ;;  %714 = vst [vmem:[%s1351_s8 + $0x88] sm:$0xff] %v464_v28 }
 0x120   : > { %746 = vst [vmem:[%s1351_s8 + $0x188] sm:$0xff] %v624_v29  ;;  %713 = vst [vmem:[%s1351_s8 + $0x80] sm:$0xff] %v459_v32  ;;  %v1018_v34 = vpop.f32.mrb[18].mxu0 }
 0x121   : > { %745 = vst [vmem:[%s1351_s8 + $0x180] sm:$0xff] %v619_v33  ;;  %v1066_v35 = vpop.f32.mrb[18].mxu1  ;;  %v474_v36 = vadd.f32 %v1018_v34, %v1344_v24  ;;  %v468_v38 = vpop.f32.mrb[19].mxu0 }
 0x122   : > { %v634_v37 = vadd.f32 %v1066_v35, %v1344_v24  ;;  %v628_v39 = vpop.f32.mrb[19].mxu1  ;;  %v469_v40 = vadd.f32 %v1344_v24, %v468_v38 }
 0x123   : > { %v629_v41 = vadd.f32 %v1344_v24, %v628_v39  ;;  %716 = vst [vmem:[%s1351_s8 + $0x98] sm:$0xff] %v474_v36 }
 0x124   : > { %748 = vst [vmem:[%s1351_s8 + $0x198] sm:$0xff] %v634_v37  ;;  %715 = vst [vmem:[%s1351_s8 + $0x90] sm:$0xff] %v469_v40  ;;  %v1021_v42 = vpop.f32.mrb[20].mxu0 }
 0x125   : > { %747 = vst [vmem:[%s1351_s8 + $0x190] sm:$0xff] %v629_v41  ;;  %v1069_v43 = vpop.f32.mrb[20].mxu1  ;;  %v484_v44 = vadd.f32 %v1021_v42, %v1344_v24  ;;  %v478_v46 = vpop.f32.mrb[21].mxu0 }
 0x126   : > { %v644_v45 = vadd.f32 %v1069_v43, %v1344_v24  ;;  %v638_v47 = vpop.f32.mrb[21].mxu1  ;;  %v479_v48 = vadd.f32 %v1344_v24, %v478_v46 }
 0x127   : > { %v639_v49 = vadd.f32 %v1344_v24, %v638_v47  ;;  %718 = vst [vmem:[%s1351_s8 + $0xa8] sm:$0xff] %v484_v44 }
 0x128   : > { %750 = vst [vmem:[%s1351_s8 + $0x1a8] sm:$0xff] %v644_v45  ;;  %717 = vst [vmem:[%s1351_s8 + $0xa0] sm:$0xff] %v479_v48  ;;  %v1024_v50 = vpop.f32.mrb[22].mxu0 }
 0x129   : > { %749 = vst [vmem:[%s1351_s8 + $0x1a0] sm:$0xff] %v639_v49  ;;  %v1072_v51 = vpop.f32.mrb[22].mxu1  ;;  %v494_v52 = vadd.f32 %v1024_v50, %v1344_v24  ;;  %v488_v54 = vpop.f32.mrb[23].mxu0 }
 0x12a   : > { %v654_v53 = vadd.f32 %v1072_v51, %v1344_v24  ;;  %v648_v55 = vpop.f32.mrb[23].mxu1  ;;  %v489_v56 = vadd.f32 %v1344_v24, %v488_v54 }
 0x12b   : > { %v649_v57 = vadd.f32 %v1344_v24, %v648_v55  ;;  %720 = vst [vmem:[%s1351_s8 + $0xb8] sm:$0xff] %v494_v52 }
 0x12c   : > { %752 = vst [vmem:[%s1351_s8 + $0x1b8] sm:$0xff] %v654_v53  ;;  %719 = vst [vmem:[%s1351_s8 + $0xb0] sm:$0xff] %v489_v56  ;;  %v1027_v58 = vpop.f32.mrb[24].mxu0 }
 0x12d   : > { %751 = vst [vmem:[%s1351_s8 + $0x1b0] sm:$0xff] %v649_v57  ;;  %v1075_v59 = vpop.f32.mrb[24].mxu1  ;;  %v504_v60 = vadd.f32 %v1027_v58, %v1344_v24  ;;  %v498_v62 = vpop.f32.mrb[25].mxu0 }
 0x12e   : > { %v664_v61 = vadd.f32 %v1075_v59, %v1344_v24  ;;  %v658_v63 = vpop.f32.mrb[25].mxu1  ;;  %v499_v0 = vadd.f32 %v1344_v24, %v498_v62 }
 0x12f   : > { %v659_v1 = vadd.f32 %v1344_v24, %v658_v63  ;;  %722 = vst [vmem:[%s1351_s8 + $0xc8] sm:$0xff] %v504_v60 }
 0x130   : > { %754 = vst [vmem:[%s1351_s8 + $0x1c8] sm:$0xff] %v664_v61  ;;  %721 = vst [vmem:[%s1351_s8 + $0xc0] sm:$0xff] %v499_v0  ;;  %v1030_v2 = vpop.f32.mrb[26].mxu0 }
 0x131   : > { %753 = vst [vmem:[%s1351_s8 + $0x1c0] sm:$0xff] %v659_v1  ;;  %v1078_v3 = vpop.f32.mrb[26].mxu1  ;;  %v514_v4 = vadd.f32 %v1030_v2, %v1344_v24  ;;  %v508_v6 = vpop.f32.mrb[27].mxu0 }
 0x132   : > { %v674_v5 = vadd.f32 %v1078_v3, %v1344_v24  ;;  %v668_v7 = vpop.f32.mrb[27].mxu1  ;;  %v509_v8 = vadd.f32 %v1344_v24, %v508_v6 }
 0x133   : > { %v669_v9 = vadd.f32 %v1344_v24, %v668_v7  ;;  %724 = vst [vmem:[%s1351_s8 + $0xd8] sm:$0xff] %v514_v4 }
 0x134   : > { %756 = vst [vmem:[%s1351_s8 + $0x1d8] sm:$0xff] %v674_v5  ;;  %723 = vst [vmem:[%s1351_s8 + $0xd0] sm:$0xff] %v509_v8  ;;  %v1033_v10 = vpop.f32.mrb[28].mxu0 }
 0x135   : > { %755 = vst [vmem:[%s1351_s8 + $0x1d0] sm:$0xff] %v669_v9  ;;  %v1081_v11 = vpop.f32.mrb[28].mxu1  ;;  %v524_v12 = vadd.f32 %v1033_v10, %v1344_v24  ;;  %v518_v14 = vpop.f32.mrb[29].mxu0 }
 0x136   : > { %v684_v13 = vadd.f32 %v1081_v11, %v1344_v24  ;;  %v678_v15 = vpop.f32.mrb[29].mxu1  ;;  %v519_v16 = vadd.f32 %v1344_v24, %v518_v14 }
 0x137   : > { %v679_v17 = vadd.f32 %v1344_v24, %v678_v15  ;;  %726 = vst [vmem:[%s1351_s8 + $0xe8] sm:$0xff] %v524_v12 }
 0x138   : > { %758 = vst [vmem:[%s1351_s8 + $0x1e8] sm:$0xff] %v684_v13  ;;  %725 = vst [vmem:[%s1351_s8 + $0xe0] sm:$0xff] %v519_v16  ;;  %v1036_v18 = vpop.f32.mrb[30].mxu0 }
 0x139   : > { %757 = vst [vmem:[%s1351_s8 + $0x1e0] sm:$0xff] %v679_v17  ;;  %v1084_v19 = vpop.f32.mrb[30].mxu1  ;;  %v534_v20 = vadd.f32 %v1036_v18, %v1344_v24  ;;  %v528_v22 = vpop.f32.mrb[31].mxu0 }
 0x13a   : > { %v694_v21 = vadd.f32 %v1084_v19, %v1344_v24  ;;  %v688_v23 = vpop.f32.mrb[31].mxu1  ;;  %v529_v25 = vadd.f32 %v1344_v24, %v528_v22 }
 0x13b   : > { %v689_v26 = vadd.f32 %v1344_v24, %v688_v23  ;;  %728 = vst [vmem:[%s1351_s8 + $0xf8] sm:$0xff] %v534_v20 }
 0x13c   : > { %760 = vst [vmem:[%s1351_s8 + $0x1f8] sm:$0xff] %v694_v21  ;;  %727 = vst [vmem:[%s1351_s8 + $0xf0] sm:$0xff] %v529_v25 }
 0x13d   : > { %759 = vst [vmem:[%s1351_s8 + $0x1f0] sm:$0xff] %v689_v26 }
 0x13e PF: > { %s13_s14 = sadd.s32 1, %s1179_s14   ;;  %s1494_s12 = smov %s1175_s13 }
 0x13f   : > { %p10_p5 = scmp.ge.s32.totalorder %s13_s14, 4   ;;  %s1495_s13 = smov %s1497_s15 }
 0x141   :  { %12 = sbr.rel (!%p10_p5) target bundleno = 2 (0x2), region = 68 }

</bundles_post_ra>
